<compile_context>
chip_gen: v5e
topology: v5e:2x2
jax: 0.10.0
libtpu: 0.0.40
codegen_flags: <defaults>
</compile_context>

<pallas_src>
import functools
import math

import jax
import jax.numpy as jnp
from jax.experimental import pallas as pl
from jax.experimental.pallas import tpu as pltpu


def _mha_kernel(q_ref, k_ref, v_ref,
                wq_ref, bq_ref, wk_ref, bk_ref, wv_ref, bv_ref,
                wo_ref, bo_ref,
                out_ref, *, group_heads: int, d_k: int, exp_dtype):
    """One (batch-block, head-group) grid step.

    q/k/v refs:   [Bt, S, D]            bf16 activations (blocked over batch)
    w{q,k,v}_ref: [n_groups, D, G*d_k]  bf16, resident (scale folded into Wq/bq)
    b{q,k,v}_ref: [n_groups, 1, G*d_k]  f32,  resident
    wo_ref:       [n_groups, G*d_k, D]  bf16, resident
    bo_ref:       [1, D]                f32,  resident
    out_ref:      [Bt, S, D]            f32 output block; also serves as the
                                        head-group reduction accumulator.
    """
    g = pl.program_id(1)
    Bt, S, D = q_ref.shape
    f32 = jnp.float32
    bf16 = jnp.bfloat16

    @pl.when(g == 0)
    def _init():
        # Start the head-group reduction from the output-projection bias.
        out_ref[...] = jnp.broadcast_to(bo_ref[...], out_ref.shape).astype(out_ref.dtype)

    # This group's resident weight slices (dynamic first-axis index, no per-step DMA).
    wq = wq_ref[g]; bq = bq_ref[g]          # [D, G*d_k], [1, G*d_k]
    wk = wk_ref[g]; bk = bk_ref[g]
    wv = wv_ref[g]; bv = bv_ref[g]
    wo = wo_ref[g]                          # [G*d_k, D]

    # ---- grouped projections: one wide (Bt*S, D) x (D, G*d_k) MXU matmul each ----
    xq = q_ref[...].reshape(Bt * S, D)
    xk = k_ref[...].reshape(Bt * S, D)
    xv = v_ref[...].reshape(Bt * S, D)
    qh = jnp.dot(xq, wq, preferred_element_type=f32) + bq   # 1/sqrt(d_k) pre-folded
    kh = jnp.dot(xk, wk, preferred_element_type=f32) + bk
    vh = jnp.dot(xv, wv, preferred_element_type=f32) + bv

    # ---- per-head attention (static unroll over this group's heads) ----
    outs = []
    for h in range(group_heads):
        lo = h * d_k
        q_h = qh[:, lo:lo + d_k].reshape(Bt, S, d_k).astype(bf16)
        k_h = kh[:, lo:lo + d_k].reshape(Bt, S, d_k).astype(bf16)
        v_h = vh[:, lo:lo + d_k].reshape(Bt, S, d_k).astype(bf16)

        s = jnp.einsum('bqe,bke->bqk', q_h, k_h, preferred_element_type=f32)
        m = jnp.max(s, axis=-1, keepdims=True)                 # f32 stats
        p = jnp.exp((s - m).astype(exp_dtype))                 # EUP; bf16 on v6e/v7x
        l = jnp.sum(p, axis=-1, keepdims=True, dtype=f32)      # f32 denominator
        o = jnp.einsum('bqk,bke->bqe', p.astype(bf16), v_h,
                       preferred_element_type=f32)             # [Bt, S, d_k]
        # Normalize the small PV output instead of the S x S probability matrix.
        o = o * pl.reciprocal(l, approx=True)
        outs.append(o.reshape(Bt * S, d_k).astype(bf16))

    # ---- this group's slice of the output projection: one K = G*d_k matmul ----
    o_cat = outs[0] if group_heads == 1 else jnp.concatenate(outs, axis=-1)
    part = jnp.dot(o_cat, wo, preferred_element_type=f32)      # [Bt*S, D]
    out_ref[...] += part.reshape(Bt, S, D).astype(out_ref.dtype)


def _pick_head_group(heads: int, d_k: int, target_width: int = 256) -> int:
    """Largest divisor G of `heads` with G*d_k <= target_width (min 1)."""
    best = 1
    for g in range(1, heads + 1):
        if heads % g == 0 and g * d_k <= target_width:
            best = g
    return best


def _vmem_bytes_estimate(bt, s, d, gd, n_groups):
    """Rough per-step VMEM working set (double-buffered blocks + intermediates)."""
    act = 3 * bt * s * d * 2 * 2            # q/k/v bf16 blocks, double-buffered
    outb = bt * s * d * 4 * 2               # f32 out block (accumulator)
    wts = 2 * (n_groups * (4 * d * gd * 2 + 3 * gd * 4) + d * 4)
    proj = 3 * bt * s * gd * (4 + 2)        # qh/kh/vh f32 + bf16 head copies
    attn = 2 * bt * s * s * (4 + 2 + 2)     # ~2 heads of scores/probs live
    epi = bt * s * gd * 2 + bt * s * d * 4  # concat + projection partial
    return act + outb + wts + proj + attn + epi


def multi_head_attention(q, k, v, params, *, heads: int,
                         batch_block: int | None = None,
                         head_group: int | None = None,
                         exp_dtype=jnp.bfloat16,
                         vmem_budget_bytes: int = 40 * 1024 * 1024):
    """q, k, v: [B, S, d_model].  params: dict of pre-transposed weights
    (W stored as [in, out]; biases as [1, d_model])."""
    B, S, D = q.shape
    assert D % heads == 0
    d_k = D // heads
    out_dtype = q.dtype

    G = head_group if head_group is not None else _pick_head_group(heads, d_k)
    assert heads % G == 0
    n_groups = heads // G
    gd = G * d_k

    # Batch block: largest divisor of B whose working set fits the budget,
    # preferring B//Bt >= 2 so the parallel axis can use both TensorCores.
    if batch_block is None:
        divs = [d for d in range(B, 0, -1) if B % d == 0]
        fitting = [d for d in divs
                   if _vmem_bytes_estimate(d, S, D, gd, n_groups) <= vmem_budget_bytes] or [1]
        multi = [d for d in fitting if B // d >= 2]
        Bt = max(multi) if multi else max(fitting)
    else:
        Bt = batch_block
    assert B % Bt == 0, "batch_block must divide batch"
    # NOTE: Bt*S should be a multiple of 8 (sublane) for unmasked output stores.

    est = _vmem_bytes_estimate(Bt, S, D, gd, n_groups)
    vmem_limit = int(min(64 * 1024 * 1024, max(32 * 1024 * 1024, int(est * 1.5))))

    scale = 1.0 / math.sqrt(d_k)
    bf16 = jnp.bfloat16

    def wsplit(w):   # [D, D] -> [n_groups, D, G*d_k]   (per-group output columns)
        return jnp.transpose(jnp.reshape(w, (D, n_groups, gd)), (1, 0, 2))

    def bsplit(b):   # [1, D] -> [n_groups, 1, G*d_k]
        return jnp.reshape(b, (n_groups, gd))[:, None, :]

    # Fold the 1/sqrt(d_k) attention scale into the Q projection.
    wq = wsplit(params["wq"] * scale).astype(bf16)
    bq = bsplit(params["bq"] * scale).astype(jnp.float32)
    wk = wsplit(params["wk"]).astype(bf16)
    bk = bsplit(params["bk"]).astype(jnp.float32)
    wv = wsplit(params["wv"]).astype(bf16)
    bv = bsplit(params["bv"]).astype(jnp.float32)
    wo = jnp.reshape(params["wo"], (n_groups, gd, D)).astype(bf16)   # per-group input rows
    bo = params["bo"].astype(jnp.float32)                            # [1, D]

    qb = q.astype(bf16)
    kb = k.astype(bf16)
    vb = v.astype(bf16)

    seq_spec = pl.BlockSpec((Bt, S, D), lambda b, g: (b, 0, 0))
    out_spec = pl.BlockSpec((Bt, S, D), lambda b, g: (b, 0, 0))
    # Weights/biases stay fully resident (constant block index -> DMA'd once).
    w_spec = pl.BlockSpec((n_groups, D, gd), lambda b, g: (0, 0, 0))
    b_spec = pl.BlockSpec((n_groups, 1, gd), lambda b, g: (0, 0, 0))
    wo_spec = pl.BlockSpec((n_groups, gd, D), lambda b, g: (0, 0, 0))
    bo_spec = pl.BlockSpec((1, D), lambda b, g: (0, 0))

    kernel = functools.partial(_mha_kernel, group_heads=G, d_k=d_k,
                               exp_dtype=exp_dtype)

    return pl.pallas_call(
        kernel,
        out_shape=jax.ShapeDtypeStruct((B, S, D), out_dtype),
        grid_spec=pltpu.PrefetchScalarGridSpec(
            num_scalar_prefetch=0,
            grid=(B // Bt, n_groups),
            in_specs=[seq_spec, seq_spec, seq_spec,
                      w_spec, b_spec,    # Wq, bq
                      w_spec, b_spec,    # Wk, bk
                      w_spec, b_spec,    # Wv, bv
                      wo_spec, bo_spec], # Wo, bo
            out_specs=out_spec,
        ),
        compiler_params=pltpu.CompilerParams(
            dimension_semantics=("parallel", "arbitrary"),
            vmem_limit_bytes=vmem_limit),
    )(qb, kb, vb, wq, bq, wk, bk, wv, bv, wo, bo)


def init_params(key, d_model):
    """Deterministic PyTorch-style init: U(-1/sqrt(in), 1/sqrt(in)).
    Weights stored pre-transposed as [in, out] so the math is x @ W + b."""
    bound = 1.0 / math.sqrt(d_model)
    keys = jax.random.split(key, 8)

    def u(kk, shape):
        return jax.random.uniform(kk, shape, jnp.float32, -bound, bound)

    return {
        "wq": u(keys[0], (d_model, d_model)), "bq": u(keys[1], (1, d_model)),
        "wk": u(keys[2], (d_model, d_model)), "bk": u(keys[3], (1, d_model)),
        "wv": u(keys[4], (d_model, d_model)), "bv": u(keys[5], (1, d_model)),
        "wo": u(keys[6], (d_model, d_model)), "bo": u(keys[7], (1, d_model)),
    }


def _reference(q, k, v, params, heads):
    """Pure-JAX f32 reference of the PyTorch forward (mask=None, eval dropout)."""
    B, S, D = q.shape
    d_k = D // heads

    def lin(x, w, b):
        return x @ w + b

    Q = lin(q, params["wq"], params["bq"]).reshape(B, S, heads, d_k).transpose(0, 2, 1, 3)
    K = lin(k, params["wk"], params["bk"]).reshape(B, S, heads, d_k).transpose(0, 2, 1, 3)
    V = lin(v, params["wv"], params["bv"]).reshape(B, S, heads, d_k).transpose(0, 2, 1, 3)
    scores = jnp.einsum("bhqd,bhkd->bhqk", Q, K) / math.sqrt(d_k)
    p = jax.nn.softmax(scores, axis=-1)
    out = jnp.einsum("bhqk,bhkd->bhqd", p, V)
    concat = out.transpose(0, 2, 1, 3).reshape(B, S, D)
    return concat @ params["wo"] + params["bo"]


if __name__ == "__main__":
    B, S, D_MODEL, HEADS = 2, 8, 32, 4

    key = jax.random.PRNGKey(0)
    kq, kk, kv, kp = jax.random.split(key, 4)
    q = jax.random.normal(kq, (B, S, D_MODEL), jnp.float32)
    k = jax.random.normal(kk, (B, S, D_MODEL), jnp.float32)
    v = jax.random.normal(kv, (B, S, D_MODEL), jnp.float32)
    params = init_params(kp, D_MODEL)

    out = multi_head_attention(q, k, v, params, heads=HEADS)
    out = jax.block_until_ready(out)

    ref = _reference(q, k, v, params, HEADS)
    assert out.shape == (B, S, D_MODEL)
    # bf16 MXU operands + bf16 exp -> looser tolerance than a pure-f32 version.
    max_err = float(jnp.max(jnp.abs(out - ref)))
    assert jnp.allclose(out, ref, atol=5e-2, rtol=5e-2), f"max abs err {max_err}"

    print("KERNEL_OK")
</pallas_src>

<mosaic_0001>
module attributes {stable_mosaic.version = 11 : i64} {
  func.func @_mha_kernel(%arg0: i32, %arg1: i32, %arg2: memref<1x8x32xbf16, #tpu.memory_space<vmem>>, %arg3: memref<1x8x32xbf16, #tpu.memory_space<vmem>>, %arg4: memref<1x8x32xbf16, #tpu.memory_space<vmem>>, %arg5: memref<1x32x32xbf16, #tpu.memory_space<vmem>>, %arg6: memref<1x1x32xf32, #tpu.memory_space<vmem>>, %arg7: memref<1x32x32xbf16, #tpu.memory_space<vmem>>, %arg8: memref<1x1x32xf32, #tpu.memory_space<vmem>>, %arg9: memref<1x32x32xbf16, #tpu.memory_space<vmem>>, %arg10: memref<1x1x32xf32, #tpu.memory_space<vmem>>, %arg11: memref<1x32x32xbf16, #tpu.memory_space<vmem>>, %arg12: memref<1x32xf32, #tpu.memory_space<vmem>>, %arg13: memref<1x8x32xf32, #tpu.memory_space<vmem>>) attributes {dimension_semantics = [#tpu.dimension_semantics<parallel>, #tpu.dimension_semantics<arbitrary>], iteration_bounds = array<i64: 2, 1>, scalar_prefetch = 0 : i64, scratch_operands = 0 : i64, tpu.core_type = #tpu.core_type<tc>, window_params = [{transform_indices = @transform_0, window_bounds = array<i64: 1, 8, 32>}, {transform_indices = @transform_1, window_bounds = array<i64: 1, 8, 32>}, {transform_indices = @transform_2, window_bounds = array<i64: 1, 8, 32>}, {pipeline_mode = #tpu.pipeline_mode<synchronous>, transform_indices = @transform_3, window_bounds = array<i64: 1, 32, 32>}, {pipeline_mode = #tpu.pipeline_mode<synchronous>, transform_indices = @transform_4, window_bounds = array<i64: 1, 1, 32>}, {pipeline_mode = #tpu.pipeline_mode<synchronous>, transform_indices = @transform_5, window_bounds = array<i64: 1, 32, 32>}, {pipeline_mode = #tpu.pipeline_mode<synchronous>, transform_indices = @transform_6, window_bounds = array<i64: 1, 1, 32>}, {pipeline_mode = #tpu.pipeline_mode<synchronous>, transform_indices = @transform_7, window_bounds = array<i64: 1, 32, 32>}, {pipeline_mode = #tpu.pipeline_mode<synchronous>, transform_indices = @transform_8, window_bounds = array<i64: 1, 1, 32>}, {pipeline_mode = #tpu.pipeline_mode<synchronous>, transform_indices = @transform_9, window_bounds = array<i64: 1, 32, 32>}, {pipeline_mode = #tpu.pipeline_mode<synchronous>, transform_indices = @transform_10, window_bounds = array<i64: 1, 32>}, {transform_indices = @transform_11, window_bounds = array<i64: 1, 8, 32>}]} {
    %c0_i32 = arith.constant 0 : i32
    %0 = arith.cmpi eq, %arg1, %c0_i32 : i32
    %1 = arith.extui %0 : i1 to i32
    %c0_i32_0 = arith.constant 0 : i32
    %2 = arith.cmpi ne, %1, %c0_i32_0 : i32
    scf.if %2 {
      %c0_48 = arith.constant 0 : index
      %c0_49 = arith.constant 0 : index
      %145 = vector.load %arg12[%c0_48, %c0_49] : memref<1x32xf32, #tpu.memory_space<vmem>>, vector<1x32xf32>
      %146 = vector.shape_cast %145 : vector<1x32xf32> to vector<1x1x32xf32>
      %147 = vector.broadcast %146 : vector<1x1x32xf32> to vector<1x8x32xf32>
      %c0_50 = arith.constant 0 : index
      %c0_51 = arith.constant 0 : index
      %c0_52 = arith.constant 0 : index
      %148 = vector.load %arg13[%c0_50, %c0_51, %c0_52] : memref<1x8x32xf32, #tpu.memory_space<vmem>>, vector<1x8x32xf32>
      tpu.vector_store %arg13[%c0_50, %c0_51, %c0_52], %147 {strides = array<i32>} : memref<1x8x32xf32, #tpu.memory_space<vmem>>, vector<1x8x32xf32>,
    } else {
    }
    %3 = arith.index_cast %arg1 : i32 to index
    %c0 = arith.constant 0 : index
    %c0_1 = arith.constant 0 : index
    %4 = vector.load %arg5[%3, %c0, %c0_1] : memref<1x32x32xbf16, #tpu.memory_space<vmem>>, vector<1x32x32xbf16>
    %5 = vector.shape_cast %4 : vector<1x32x32xbf16> to vector<32x32xbf16>
    %6 = arith.index_cast %arg1 : i32 to index
    %c0_2 = arith.constant 0 : index
    %c0_3 = arith.constant 0 : index
    %7 = vector.load %arg6[%6, %c0_2, %c0_3] : memref<1x1x32xf32, #tpu.memory_space<vmem>>, vector<1x1x32xf32>
    %8 = vector.shape_cast %7 : vector<1x1x32xf32> to vector<1x32xf32>
    %9 = arith.index_cast %arg1 : i32 to index
    %c0_4 = arith.constant 0 : index
    %c0_5 = arith.constant 0 : index
    %10 = vector.load %arg7[%9, %c0_4, %c0_5] : memref<1x32x32xbf16, #tpu.memory_space<vmem>>, vector<1x32x32xbf16>
    %11 = vector.shape_cast %10 : vector<1x32x32xbf16> to vector<32x32xbf16>
    %12 = arith.index_cast %arg1 : i32 to index
    %c0_6 = arith.constant 0 : index
    %c0_7 = arith.constant 0 : index
    %13 = vector.load %arg8[%12, %c0_6, %c0_7] : memref<1x1x32xf32, #tpu.memory_space<vmem>>, vector<1x1x32xf32>
    %14 = vector.shape_cast %13 : vector<1x1x32xf32> to vector<1x32xf32>
    %15 = arith.index_cast %arg1 : i32 to index
    %c0_8 = arith.constant 0 : index
    %c0_9 = arith.constant 0 : index
    %16 = vector.load %arg9[%15, %c0_8, %c0_9] : memref<1x32x32xbf16, #tpu.memory_space<vmem>>, vector<1x32x32xbf16>
    %17 = vector.shape_cast %16 : vector<1x32x32xbf16> to vector<32x32xbf16>
    %18 = arith.index_cast %arg1 : i32 to index
    %c0_10 = arith.constant 0 : index
    %c0_11 = arith.constant 0 : index
    %19 = vector.load %arg10[%18, %c0_10, %c0_11] : memref<1x1x32xf32, #tpu.memory_space<vmem>>, vector<1x1x32xf32>
    %20 = vector.shape_cast %19 : vector<1x1x32xf32> to vector<1x32xf32>
    %21 = arith.index_cast %arg1 : i32 to index
    %c0_12 = arith.constant 0 : index
    %c0_13 = arith.constant 0 : index
    %22 = vector.load %arg11[%21, %c0_12, %c0_13] : memref<1x32x32xbf16, #tpu.memory_space<vmem>>, vector<1x32x32xbf16>
    %23 = vector.shape_cast %22 : vector<1x32x32xbf16> to vector<32x32xbf16>
    %c0_14 = arith.constant 0 : index
    %c0_15 = arith.constant 0 : index
    %c0_16 = arith.constant 0 : index
    %24 = vector.load %arg2[%c0_14, %c0_15, %c0_16] : memref<1x8x32xbf16, #tpu.memory_space<vmem>>, vector<1x8x32xbf16>
    %25 = vector.shape_cast %24 : vector<1x8x32xbf16> to vector<8x32xbf16>
    %c0_17 = arith.constant 0 : index
    %c0_18 = arith.constant 0 : index
    %c0_19 = arith.constant 0 : index
    %26 = vector.load %arg3[%c0_17, %c0_18, %c0_19] : memref<1x8x32xbf16, #tpu.memory_space<vmem>>, vector<1x8x32xbf16>
    %27 = vector.shape_cast %26 : vector<1x8x32xbf16> to vector<8x32xbf16>
    %c0_20 = arith.constant 0 : index
    %c0_21 = arith.constant 0 : index
    %c0_22 = arith.constant 0 : index
    %28 = vector.load %arg4[%c0_20, %c0_21, %c0_22] : memref<1x8x32xbf16, #tpu.memory_space<vmem>>, vector<1x8x32xbf16>
    %29 = vector.shape_cast %28 : vector<1x8x32xbf16> to vector<8x32xbf16>
    %cst = arith.constant dense<0.000000e+00> : vector<8x32xf32>
    %30 = tpu.matmul %25, %5, %cst {dimension_numbers = #tpu.dot_dimension_numbers<[1], [0], [0], [1], [0, 0, 1, 1], [], []>} : vector<8x32xbf16>, vector<32x32xbf16>, vector<8x32xf32> -> vector<8x32xf32>
    %31 = vector.broadcast %8 : vector<1x32xf32> to vector<8x32xf32>
    %32 = arith.addf %30, %31 : vector<8x32xf32>
    %cst_23 = arith.constant dense<0.000000e+00> : vector<8x32xf32>
    %33 = tpu.matmul %27, %11, %cst_23 {dimension_numbers = #tpu.dot_dimension_numbers<[1], [0], [0], [1], [0, 0, 1, 1], [], []>} : vector<8x32xbf16>, vector<32x32xbf16>, vector<8x32xf32> -> vector<8x32xf32>
    %34 = vector.broadcast %14 : vector<1x32xf32> to vector<8x32xf32>
    %35 = arith.addf %33, %34 : vector<8x32xf32>
    %cst_24 = arith.constant dense<0.000000e+00> : vector<8x32xf32>
    %36 = tpu.matmul %29, %17, %cst_24 {dimension_numbers = #tpu.dot_dimension_numbers<[1], [0], [0], [1], [0, 0, 1, 1], [], []>} : vector<8x32xbf16>, vector<32x32xbf16>, vector<8x32xf32> -> vector<8x32xf32>
    %37 = vector.broadcast %20 : vector<1x32xf32> to vector<8x32xf32>
    %38 = arith.addf %36, %37 : vector<8x32xf32>
    %39 = vector.extract_strided_slice %32 {offsets = [0, 0], sizes = [8, 8], strides = [1, 1]} : vector<8x32xf32> to vector<8x8xf32>
    %40 = vector.shape_cast %39 : vector<8x8xf32> to vector<1x8x8xf32>
    %41 = arith.truncf %40 : vector<1x8x8xf32> to vector<1x8x8xbf16>
    %42 = vector.extract_strided_slice %35 {offsets = [0, 0], sizes = [8, 8], strides = [1, 1]} : vector<8x32xf32> to vector<8x8xf32>
    %43 = vector.shape_cast %42 : vector<8x8xf32> to vector<1x8x8xf32>
    %44 = arith.truncf %43 : vector<1x8x8xf32> to vector<1x8x8xbf16>
    %45 = vector.extract_strided_slice %38 {offsets = [0, 0], sizes = [8, 8], strides = [1, 1]} : vector<8x32xf32> to vector<8x8xf32>
    %46 = vector.shape_cast %45 : vector<8x8xf32> to vector<1x8x8xf32>
    %47 = arith.truncf %46 : vector<1x8x8xf32> to vector<1x8x8xbf16>
    "tpu.trace_start"() <{level = 10 : i32, message = "bqe,bke->bqk"}> : () -> ()
    %cst_25 = arith.constant dense<0.000000e+00> : vector<1x8x8xf32>
    %48 = tpu.matmul %41, %44, %cst_25 {dimension_numbers = #tpu.dot_dimension_numbers<[2], [2], [1], [1], [0, 0, 0, 1, 1, 1], [0], [0]>} : vector<1x8x8xbf16>, vector<1x8x8xbf16>, vector<1x8x8xf32> -> vector<1x8x8xf32>
    "tpu.trace_stop"() : () -> ()
    %cst_26 = arith.constant dense<0xFF800000> : vector<1x8xf32>
    %49 = vector.multi_reduction <maximumf>, %48, %cst_26 [2] : vector<1x8x8xf32> to vector<1x8xf32>
    %50 = vector.shape_cast %49 : vector<1x8xf32> to vector<1x8x1xf32>
    %51 = vector.broadcast %50 : vector<1x8x1xf32> to vector<1x8x8xf32>
    %52 = arith.subf %48, %51 : vector<1x8x8xf32>
    %53 = arith.truncf %52 : vector<1x8x8xf32> to vector<1x8x8xbf16>
    %54 = math.exp %53 : vector<1x8x8xbf16>
    %55 = arith.extf %54 : vector<1x8x8xbf16> to vector<1x8x8xf32>
    %cst_27 = arith.constant dense<0.000000e+00> : vector<1x8xf32>
    %56 = vector.multi_reduction <add>, %55, %cst_27 [2] : vector<1x8x8xf32> to vector<1x8xf32>
    %57 = vector.shape_cast %56 : vector<1x8xf32> to vector<1x8x1xf32>
    "tpu.trace_start"() <{level = 10 : i32, message = "bqk,bke->bqe"}> : () -> ()
    %cst_28 = arith.constant dense<0.000000e+00> : vector<1x8x8xf32>
    %58 = tpu.matmul %54, %47, %cst_28 {dimension_numbers = #tpu.dot_dimension_numbers<[2], [1], [1], [2], [0, 0, 0, 1, 1, 2], [0], [0]>} : vector<1x8x8xbf16>, vector<1x8x8xbf16>, vector<1x8x8xf32> -> vector<1x8x8xf32>
    "tpu.trace_stop"() : () -> ()
    %59 = tpu.reciprocal %57 {approx = true} : vector<1x8x1xf32> -> vector<1x8x1xf32>
    %60 = vector.broadcast %59 : vector<1x8x1xf32> to vector<1x8x8xf32>
    %61 = arith.mulf %58, %60 : vector<1x8x8xf32>
    %62 = vector.shape_cast %61 : vector<1x8x8xf32> to vector<8x8xf32>
    %63 = arith.truncf %62 : vector<8x8xf32> to vector<8x8xbf16>
    %64 = vector.extract_strided_slice %32 {offsets = [0, 8], sizes = [8, 8], strides = [1, 1]} : vector<8x32xf32> to vector<8x8xf32>
    %65 = vector.shape_cast %64 : vector<8x8xf32> to vector<1x8x8xf32>
    %66 = arith.truncf %65 : vector<1x8x8xf32> to vector<1x8x8xbf16>
    %67 = vector.extract_strided_slice %35 {offsets = [0, 8], sizes = [8, 8], strides = [1, 1]} : vector<8x32xf32> to vector<8x8xf32>
    %68 = vector.shape_cast %67 : vector<8x8xf32> to vector<1x8x8xf32>
    %69 = arith.truncf %68 : vector<1x8x8xf32> to vector<1x8x8xbf16>
    %70 = vector.extract_strided_slice %38 {offsets = [0, 8], sizes = [8, 8], strides = [1, 1]} : vector<8x32xf32> to vector<8x8xf32>
    %71 = vector.shape_cast %70 : vector<8x8xf32> to vector<1x8x8xf32>
    %72 = arith.truncf %71 : vector<1x8x8xf32> to vector<1x8x8xbf16>
    "tpu.trace_start"() <{level = 10 : i32, message = "bqe,bke->bqk"}> : () -> ()
    %cst_29 = arith.constant dense<0.000000e+00> : vector<1x8x8xf32>
    %73 = tpu.matmul %66, %69, %cst_29 {dimension_numbers = #tpu.dot_dimension_numbers<[2], [2], [1], [1], [0, 0, 0, 1, 1, 1], [0], [0]>} : vector<1x8x8xbf16>, vector<1x8x8xbf16>, vector<1x8x8xf32> -> vector<1x8x8xf32>
    "tpu.trace_stop"() : () -> ()
    %cst_30 = arith.constant dense<0xFF800000> : vector<1x8xf32>
    %74 = vector.multi_reduction <maximumf>, %73, %cst_30 [2] : vector<1x8x8xf32> to vector<1x8xf32>
    %75 = vector.shape_cast %74 : vector<1x8xf32> to vector<1x8x1xf32>
    %76 = vector.broadcast %75 : vector<1x8x1xf32> to vector<1x8x8xf32>
    %77 = arith.subf %73, %76 : vector<1x8x8xf32>
    %78 = arith.truncf %77 : vector<1x8x8xf32> to vector<1x8x8xbf16>
    %79 = math.exp %78 : vector<1x8x8xbf16>
    %80 = arith.extf %79 : vector<1x8x8xbf16> to vector<1x8x8xf32>
    %cst_31 = arith.constant dense<0.000000e+00> : vector<1x8xf32>
    %81 = vector.multi_reduction <add>, %80, %cst_31 [2] : vector<1x8x8xf32> to vector<1x8xf32>
    %82 = vector.shape_cast %81 : vector<1x8xf32> to vector<1x8x1xf32>
    "tpu.trace_start"() <{level = 10 : i32, message = "bqk,bke->bqe"}> : () -> ()
    %cst_32 = arith.constant dense<0.000000e+00> : vector<1x8x8xf32>
    %83 = tpu.matmul %79, %72, %cst_32 {dimension_numbers = #tpu.dot_dimension_numbers<[2], [1], [1], [2], [0, 0, 0, 1, 1, 2], [0], [0]>} : vector<1x8x8xbf16>, vector<1x8x8xbf16>, vector<1x8x8xf32> -> vector<1x8x8xf32>
    "tpu.trace_stop"() : () -> ()
    %84 = tpu.reciprocal %82 {approx = true} : vector<1x8x1xf32> -> vector<1x8x1xf32>
    %85 = vector.broadcast %84 : vector<1x8x1xf32> to vector<1x8x8xf32>
    %86 = arith.mulf %83, %85 : vector<1x8x8xf32>
    %87 = vector.shape_cast %86 : vector<1x8x8xf32> to vector<8x8xf32>
    %88 = arith.truncf %87 : vector<8x8xf32> to vector<8x8xbf16>
    %89 = vector.extract_strided_slice %32 {offsets = [0, 16], sizes = [8, 8], strides = [1, 1]} : vector<8x32xf32> to vector<8x8xf32>
    %90 = vector.shape_cast %89 : vector<8x8xf32> to vector<1x8x8xf32>
    %91 = arith.truncf %90 : vector<1x8x8xf32> to vector<1x8x8xbf16>
    %92 = vector.extract_strided_slice %35 {offsets = [0, 16], sizes = [8, 8], strides = [1, 1]} : vector<8x32xf32> to vector<8x8xf32>
    %93 = vector.shape_cast %92 : vector<8x8xf32> to vector<1x8x8xf32>
    %94 = arith.truncf %93 : vector<1x8x8xf32> to vector<1x8x8xbf16>
    %95 = vector.extract_strided_slice %38 {offsets = [0, 16], sizes = [8, 8], strides = [1, 1]} : vector<8x32xf32> to vector<8x8xf32>
    %96 = vector.shape_cast %95 : vector<8x8xf32> to vector<1x8x8xf32>
    %97 = arith.truncf %96 : vector<1x8x8xf32> to vector<1x8x8xbf16>
    "tpu.trace_start"() <{level = 10 : i32, message = "bqe,bke->bqk"}> : () -> ()
    %cst_33 = arith.constant dense<0.000000e+00> : vector<1x8x8xf32>
    %98 = tpu.matmul %91, %94, %cst_33 {dimension_numbers = #tpu.dot_dimension_numbers<[2], [2], [1], [1], [0, 0, 0, 1, 1, 1], [0], [0]>} : vector<1x8x8xbf16>, vector<1x8x8xbf16>, vector<1x8x8xf32> -> vector<1x8x8xf32>
    "tpu.trace_stop"() : () -> ()
    %cst_34 = arith.constant dense<0xFF800000> : vector<1x8xf32>
    %99 = vector.multi_reduction <maximumf>, %98, %cst_34 [2] : vector<1x8x8xf32> to vector<1x8xf32>
    %100 = vector.shape_cast %99 : vector<1x8xf32> to vector<1x8x1xf32>
    %101 = vector.broadcast %100 : vector<1x8x1xf32> to vector<1x8x8xf32>
    %102 = arith.subf %98, %101 : vector<1x8x8xf32>
    %103 = arith.truncf %102 : vector<1x8x8xf32> to vector<1x8x8xbf16>
    %104 = math.exp %103 : vector<1x8x8xbf16>
    %105 = arith.extf %104 : vector<1x8x8xbf16> to vector<1x8x8xf32>
    %cst_35 = arith.constant dense<0.000000e+00> : vector<1x8xf32>
    %106 = vector.multi_reduction <add>, %105, %cst_35 [2] : vector<1x8x8xf32> to vector<1x8xf32>
    %107 = vector.shape_cast %106 : vector<1x8xf32> to vector<1x8x1xf32>
    "tpu.trace_start"() <{level = 10 : i32, message = "bqk,bke->bqe"}> : () -> ()
    %cst_36 = arith.constant dense<0.000000e+00> : vector<1x8x8xf32>
    %108 = tpu.matmul %104, %97, %cst_36 {dimension_numbers = #tpu.dot_dimension_numbers<[2], [1], [1], [2], [0, 0, 0, 1, 1, 2], [0], [0]>} : vector<1x8x8xbf16>, vector<1x8x8xbf16>, vector<1x8x8xf32> -> vector<1x8x8xf32>
    "tpu.trace_stop"() : () -> ()
    %109 = tpu.reciprocal %107 {approx = true} : vector<1x8x1xf32> -> vector<1x8x1xf32>
    %110 = vector.broadcast %109 : vector<1x8x1xf32> to vector<1x8x8xf32>
    %111 = arith.mulf %108, %110 : vector<1x8x8xf32>
    %112 = vector.shape_cast %111 : vector<1x8x8xf32> to vector<8x8xf32>
    %113 = arith.truncf %112 : vector<8x8xf32> to vector<8x8xbf16>
    %114 = vector.extract_strided_slice %32 {offsets = [0, 24], sizes = [8, 8], strides = [1, 1]} : vector<8x32xf32> to vector<8x8xf32>
    %115 = vector.shape_cast %114 : vector<8x8xf32> to vector<1x8x8xf32>
    %116 = arith.truncf %115 : vector<1x8x8xf32> to vector<1x8x8xbf16>
    %117 = vector.extract_strided_slice %35 {offsets = [0, 24], sizes = [8, 8], strides = [1, 1]} : vector<8x32xf32> to vector<8x8xf32>
    %118 = vector.shape_cast %117 : vector<8x8xf32> to vector<1x8x8xf32>
    %119 = arith.truncf %118 : vector<1x8x8xf32> to vector<1x8x8xbf16>
    %120 = vector.extract_strided_slice %38 {offsets = [0, 24], sizes = [8, 8], strides = [1, 1]} : vector<8x32xf32> to vector<8x8xf32>
    %121 = vector.shape_cast %120 : vector<8x8xf32> to vector<1x8x8xf32>
    %122 = arith.truncf %121 : vector<1x8x8xf32> to vector<1x8x8xbf16>
    "tpu.trace_start"() <{level = 10 : i32, message = "bqe,bke->bqk"}> : () -> ()
    %cst_37 = arith.constant dense<0.000000e+00> : vector<1x8x8xf32>
    %123 = tpu.matmul %116, %119, %cst_37 {dimension_numbers = #tpu.dot_dimension_numbers<[2], [2], [1], [1], [0, 0, 0, 1, 1, 1], [0], [0]>} : vector<1x8x8xbf16>, vector<1x8x8xbf16>, vector<1x8x8xf32> -> vector<1x8x8xf32>
    "tpu.trace_stop"() : () -> ()
    %cst_38 = arith.constant dense<0xFF800000> : vector<1x8xf32>
    %124 = vector.multi_reduction <maximumf>, %123, %cst_38 [2] : vector<1x8x8xf32> to vector<1x8xf32>
    %125 = vector.shape_cast %124 : vector<1x8xf32> to vector<1x8x1xf32>
    %126 = vector.broadcast %125 : vector<1x8x1xf32> to vector<1x8x8xf32>
    %127 = arith.subf %123, %126 : vector<1x8x8xf32>
    %128 = arith.truncf %127 : vector<1x8x8xf32> to vector<1x8x8xbf16>
    %129 = math.exp %128 : vector<1x8x8xbf16>
    %130 = arith.extf %129 : vector<1x8x8xbf16> to vector<1x8x8xf32>
    %cst_39 = arith.constant dense<0.000000e+00> : vector<1x8xf32>
    %131 = vector.multi_reduction <add>, %130, %cst_39 [2] : vector<1x8x8xf32> to vector<1x8xf32>
    %132 = vector.shape_cast %131 : vector<1x8xf32> to vector<1x8x1xf32>
    "tpu.trace_start"() <{level = 10 : i32, message = "bqk,bke->bqe"}> : () -> ()
    %cst_40 = arith.constant dense<0.000000e+00> : vector<1x8x8xf32>
    %133 = tpu.matmul %129, %122, %cst_40 {dimension_numbers = #tpu.dot_dimension_numbers<[2], [1], [1], [2], [0, 0, 0, 1, 1, 2], [0], [0]>} : vector<1x8x8xbf16>, vector<1x8x8xbf16>, vector<1x8x8xf32> -> vector<1x8x8xf32>
    "tpu.trace_stop"() : () -> ()
    %134 = tpu.reciprocal %132 {approx = true} : vector<1x8x1xf32> -> vector<1x8x1xf32>
    %135 = vector.broadcast %134 : vector<1x8x1xf32> to vector<1x8x8xf32>
    %136 = arith.mulf %133, %135 : vector<1x8x8xf32>
    %137 = vector.shape_cast %136 : vector<1x8x8xf32> to vector<8x8xf32>
    %138 = arith.truncf %137 : vector<8x8xf32> to vector<8x8xbf16>
    %139 = tpu.concatenate %63, %88, %113, %138 in 1 : vector<8x8xbf16>, vector<8x8xbf16>, vector<8x8xbf16>, vector<8x8xbf16> -> vector<8x32xbf16>
    %cst_41 = arith.constant dense<0.000000e+00> : vector<8x32xf32>
    %140 = tpu.matmul %139, %23, %cst_41 {dimension_numbers = #tpu.dot_dimension_numbers<[1], [0], [0], [1], [0, 0, 1, 1], [], []>} : vector<8x32xbf16>, vector<32x32xbf16>, vector<8x32xf32> -> vector<8x32xf32>
    %c0_42 = arith.constant 0 : index
    %c0_43 = arith.constant 0 : index
    %c0_44 = arith.constant 0 : index
    %141 = vector.load %arg13[%c0_42, %c0_43, %c0_44] : memref<1x8x32xf32, #tpu.memory_space<vmem>>, vector<1x8x32xf32>
    %142 = vector.shape_cast %140 : vector<8x32xf32> to vector<1x8x32xf32>
    %143 = arith.addf %141, %142 : vector<1x8x32xf32>
    %c0_45 = arith.constant 0 : index
    %c0_46 = arith.constant 0 : index
    %c0_47 = arith.constant 0 : index
    %144 = vector.load %arg13[%c0_45, %c0_46, %c0_47] : memref<1x8x32xf32, #tpu.memory_space<vmem>>, vector<1x8x32xf32>
    tpu.vector_store %arg13[%c0_45, %c0_46, %c0_47], %143 {strides = array<i32>} : memref<1x8x32xf32, #tpu.memory_space<vmem>>, vector<1x8x32xf32>,
    return
  }
  func.func @transform_0(%arg0: i32, %arg1: i32) -> (i32, i32, i32) {
    %c0_i32 = arith.constant 0 : i32
    %c0_i32_0 = arith.constant 0 : i32
    %c0_i32_1 = arith.constant 0 : i32
    return %arg0, %c0_i32, %c0_i32_0 : i32, i32, i32
  }
  func.func @transform_1(%arg0: i32, %arg1: i32) -> (i32, i32, i32) {
    %c0_i32 = arith.constant 0 : i32
    %c0_i32_0 = arith.constant 0 : i32
    %c0_i32_1 = arith.constant 0 : i32
    return %arg0, %c0_i32, %c0_i32_0 : i32, i32, i32
  }
  func.func @transform_2(%arg0: i32, %arg1: i32) -> (i32, i32, i32) {
    %c0_i32 = arith.constant 0 : i32
    %c0_i32_0 = arith.constant 0 : i32
    %c0_i32_1 = arith.constant 0 : i32
    return %arg0, %c0_i32, %c0_i32_0 : i32, i32, i32
  }
  func.func @transform_3(%arg0: i32, %arg1: i32) -> (i32, i32, i32) {
    %c0_i32 = arith.constant 0 : i32
    %c0_i32_0 = arith.constant 0 : i32
    %c0_i32_1 = arith.constant 0 : i32
    %c0_i32_2 = arith.constant 0 : i32
    return %c0_i32, %c0_i32_0, %c0_i32_1 : i32, i32, i32
  }
  func.func @transform_4(%arg0: i32, %arg1: i32) -> (i32, i32, i32) {
    %c0_i32 = arith.constant 0 : i32
    %c0_i32_0 = arith.constant 0 : i32
    %c0_i32_1 = arith.constant 0 : i32
    %c0_i32_2 = arith.constant 0 : i32
    return %c0_i32, %c0_i32_0, %c0_i32_1 : i32, i32, i32
  }
  func.func @transform_5(%arg0: i32, %arg1: i32) -> (i32, i32, i32) {
    %c0_i32 = arith.constant 0 : i32
    %c0_i32_0 = arith.constant 0 : i32
    %c0_i32_1 = arith.constant 0 : i32
    %c0_i32_2 = arith.constant 0 : i32
    return %c0_i32, %c0_i32_0, %c0_i32_1 : i32, i32, i32
  }
  func.func @transform_6(%arg0: i32, %arg1: i32) -> (i32, i32, i32) {
    %c0_i32 = arith.constant 0 : i32
    %c0_i32_0 = arith.constant 0 : i32
    %c0_i32_1 = arith.constant 0 : i32
    %c0_i32_2 = arith.constant 0 : i32
    return %c0_i32, %c0_i32_0, %c0_i32_1 : i32, i32, i32
  }
  func.func @transform_7(%arg0: i32, %arg1: i32) -> (i32, i32, i32) {
    %c0_i32 = arith.constant 0 : i32
    %c0_i32_0 = arith.constant 0 : i32
    %c0_i32_1 = arith.constant 0 : i32
    %c0_i32_2 = arith.constant 0 : i32
    return %c0_i32, %c0_i32_0, %c0_i32_1 : i32, i32, i32
  }
  func.func @transform_8(%arg0: i32, %arg1: i32) -> (i32, i32, i32) {
    %c0_i32 = arith.constant 0 : i32
    %c0_i32_0 = arith.constant 0 : i32
    %c0_i32_1 = arith.constant 0 : i32
    %c0_i32_2 = arith.constant 0 : i32
    return %c0_i32, %c0_i32_0, %c0_i32_1 : i32, i32, i32
  }
  func.func @transform_9(%arg0: i32, %arg1: i32) -> (i32, i32, i32) {
    %c0_i32 = arith.constant 0 : i32
    %c0_i32_0 = arith.constant 0 : i32
    %c0_i32_1 = arith.constant 0 : i32
    %c0_i32_2 = arith.constant 0 : i32
    return %c0_i32, %c0_i32_0, %c0_i32_1 : i32, i32, i32
  }
  func.func @transform_10(%arg0: i32, %arg1: i32) -> (i32, i32) {
    %c0_i32 = arith.constant 0 : i32
    %c0_i32_0 = arith.constant 0 : i32
    %c0_i32_1 = arith.constant 0 : i32
    return %c0_i32, %c0_i32_0 : i32, i32
  }
  func.func @transform_11(%arg0: i32, %arg1: i32) -> (i32, i32, i32) {
    %c0_i32 = arith.constant 0 : i32
    %c0_i32_0 = arith.constant 0 : i32
    %c0_i32_1 = arith.constant 0 : i32
    return %arg0, %c0_i32, %c0_i32_0 : i32, i32, i32
  }
}

</mosaic_0001>

<bundles_post_ra>
// kernel: tpu_custom_call.1
= control target key start
LH: loop header
LB: loop body
LE: loop exit
PB: predicated region body
PF: predicated region fallthrough
CT: control target
= control target key end

     0   :  { %s2056_s0 = inlined_call_operand.hbm [shape: bf16[2,8,32], index: 0, kind: input, shape index: {}]   ;;  %s2057_s1 = inlined_call_operand.hbm [shape: bf16[2,8,32], index: 1, kind: input, shape index: {}]   ;;  %s2058_s2 = inlined_call_operand.hbm [shape: bf16[2,8,32], index: 2, kind: input, shape index: {}]   ;;  %s2059_s3 = inlined_call_operand.hbm [shape: bf16[1,32,32], index: 3, kind: input, shape index: {}]   ;;  %s2060_s4 = inlined_call_operand.vmem [shape: f32[1,1,32], index: 4, kind: input, shape index: {}]   ;;  %s2061_s5 = inlined_call_operand.hbm [shape: bf16[1,32,32], index: 5, kind: input, shape index: {}]   ;;  %s2062_s6 = inlined_call_operand.vmem [shape: f32[1,1,32], index: 6, kind: input, shape index: {}]   ;;  %s2063_s7 = inlined_call_operand.hbm [shape: bf16[1,32,32], index: 7, kind: input, shape index: {}]   ;;  %s2064_s8 = inlined_call_operand.vmem [shape: f32[1,1,32], index: 8, kind: input, shape index: {}]   ;;  %s2065_s9 = inlined_call_operand.hbm [shape: bf16[1,32,32], index: 9, kind: input, shape index: {}]   ;;  %s2066_s10 = inlined_call_operand.vmem [shape: f32[1,32], index: 10, kind: input, shape index: {}]   ;;  %s2067_s11 = inlined_call_operand.hbm [shape: f32[2,8,32], index: 11, kind: output, shape index: {}]  }
   0x1   :  { %2082 = sst [smem:[#allocation27_spill]] %s2056_s0 }
   0x2   :  { %2083 = sst [smem:[#allocation28_spill]] %s2057_s1 }
   0x3   :  { %2084 = sst [smem:[#allocation29_spill]] %s2059_s3 }
   0x4   :  { %2085 = sst [smem:[#allocation30_spill]] %s2061_s5 }
   0x5   :  { %2086 = sst [smem:[#allocation31_spill]] %s2063_s7 }
   0x6   :  { %2087 = sst [smem:[#allocation32_spill]] %s2065_s9 }
   0x7   :  { %2088 = sst [smem:[#allocation33_spill]] %s2067_s11 }
   0x8   :  { %16 = vsyncpa [#allocation3], 0 }
   0x9   :  { %18 = vsyncpa [#allocation3 + $0x1], 0 }
   0xa   :  { %19 = vsyncpa [#allocation6], 0 }
   0xb   :  { %21 = vsyncpa [#allocation6 + $0x1], 0 }
   0xc   :  { %22 = vsyncpa [#allocation9], 0 }
   0xd   :  { %23 = vsyncpa [#allocation12], 0 }
   0xe   :  { %24 = vsyncpa [#allocation4], 0 }
   0xf   :  { %26 = vsyncpa [#allocation4 + $0x1], 0  ;;  %s1782_s17 = smov 0   ;;  %s1784_s18 = smov 0  }
  0x10   :  { %s1786_s19 = smov 0   ;;  %s1788_s20 = smov 0  }
  0x11   :  { %s1790_s21 = smov 0   ;;  %s1792_s22 = smov 0  }
  0x12 LB: > { %2089 = sst [smem:[#allocation20_spill]] %s1688_s17  ;;  %s1813_s23 = sadd.s32 4294967295, %s1708_s22   ;;  %s1708_s22 = sphi %s1792_s22, %s32_s22   ;;  %s1704_s21 = sphi %s1790_s21, %s2119_s21   ;;  %s1700_s20 = sphi %s1788_s20, %s2118_s20   ;;  %s1696_s19 = sphi %s1786_s19, %s2122_s19   ;;  %s1692_s18 = sphi %s1784_s18, %s2121_s18   ;;  %s1688_s17 = sphi %s1782_s17, %s2120_s17  }
  0x13   : > { %2090 = sst [smem:[#allocation21_spill]] %s1704_s21  ;;  %p1186_p0 = scmp.ge.s32.totalorder %s1708_s22, 1 }
  0x14   : > { %2091 = sst [smem:[#allocation22_spill]] %s1708_s22  ;;  %p65_p1 = scmp.eq.s32.totalorder %s1813_s23, 0 }
  0x15   : > { %p321_p2 = scmp.lt.s32.totalorder %s1708_s22, 3  ;;  %s2092_s3 = sld [smem:[#allocation29_spill]] }
  0x16   : > { %s1710_s28 = smov [#allocation8]   ;;  %p1191_p6 = scmp.ge.s32.totalorder %s1708_s22, 2 }
  0x17   : > { %p1821_p3 = pnand %p1186_p0, %p321_p2  ;;  %s334_s29 = sshll.u32 %s1710_s28, 4  ;;  %s335_s29 = int_to_ptr.vmem [resolvable:$true] %s334_s29 }
  0x18   : > { %s2095_s7 = sld [smem:[#allocation31_spill]]  ;;  %s2068_s15 = smov 64  }
  0x19   : > { %p1287_p4 = pneg %p1821_p3  ;;  %s2070_s16 = smov 4  }
  0x1a   : > { %s1713_s24 = smov [#allocation11]   ;;  %s1185_s28 = sadd.s32 4294967294, %s1708_s22  }
  0x1b   : > { %s332_s26 = sshll.u32 %s2092_s3, 4  ;;  %p1829_p5 = pnand %p1287_p4, %p65_p1  ;;  %s333_s26 = int_to_ptr.hbm [resolvable:$true] %s332_s26 }
  0x1c   : > { %s368_s25 = sshll.u32 %s1713_s24, 4  ;;  %s44_s12 = sadd.s32 1, %s1704_s21  ;;  %s369_s25 = int_to_ptr.vmem [resolvable:$true] %s368_s25 }
  0x1d   : > { %1290 = dma.hbm_to_vmem [thread:$0]  (!%p1829_p5), %s333_s26, 256, %s335_s29, [#allocation9], %s2068_s15, %s2068_s15, %s2070_s16  }
  0x1e   : > { %s366_s14 = sshll.u32 %s2095_s7, 4  ;;  %p46_p7 = scmp.ge.s32.totalorder %s44_s12, 2  ;;  %s367_s14 = int_to_ptr.hbm [resolvable:$true] %s366_s14 }
  0x1f   : > { %1296 = dma.hbm_to_vmem [thread:$0]  (!%p1829_p5), %s367_s14, 256, %s369_s25, [#allocation12], %s2068_s15, %s2068_s15, %s2070_s16  }
  0x20   : > { %s51_s13 = sadd.s32 1, %s1696_s19  ;;  %p58_p8 = scmp.ne.s32.totalorder %s1696_s19, %s1692_s18 }
  0x21   : > { %p59_p9 = scmp.eq.s32.totalorder %s1708_s22, 0  ;;  %s2124_s12 = smov (%p46_p7, %s44_s12), 0 }
  0x22   : > { %2096 = sst [smem:[#allocation23_spill]] %s2124_s12  ;;  %p64_p11 = scmp.ne.s32.totalorder %s1692_s18, %s1688_s17 }
  0x23   : > { %p1855_p10 = por %p59_p9, %p58_p8  ;;  %s48_s29 = ssub.s32 %s1704_s21, %s2124_s12 }
  0x24   : > { %p308_p12 = scmp.eq.s32.totalorder %s1813_s23, 1  ;;  %p49_p13 = scmp.eq.s32.totalorder %s48_s29, 0 }
  0x25   : > { %p1866_p0 = por %p65_p1, %p64_p11  ;;  %p314_p4 = scmp.eq.s32.totalorder %s1185_s28, 1 }
  0x26   : > { %p1870_p2 = por %p308_p12, %p58_p8  ;;  %p1318_p9 = scmp.lt.s32.totalorder %s1708_s22, 2 }
  0x27   : > { %s1875_s25 = scalar_select %p49_p13, %s1696_s19, %s51_s13  }
  0x28   : > { %s2099_s24 = scalar_select %p1870_p2, 1, 0 }
  0x29   : > { %2101 = sst [smem:[#allocation25_spill]] %s1875_s25  ;;  %p1877_p7 = por %p314_p4, %p64_p11 }
  0x2a   : > { %2100 = sst [smem:[#allocation24_spill]] %s2099_s24  ;;  %s2076_s16 = sand.u32 1, %s1696_s19  }
  0x2b   : > { %s2102_s15 = scalar_select %p1877_p7, 1, 0 }
  0x2c   : > { %s1884_s3 = sshll.u32 %s1704_s21, 2  ;;  %s1888_s29 = sshll.u32 %s2076_s16, 2 }
  0x2d   : > { %2103 = sst [smem:[#allocation26_spill]] %s2102_s15  ;;  %p1892_p8 = pnand %p1318_p9, %p1855_p10 }
  0x2e   : > { %s421_s28 = sand.u32 1, %s1708_s22   ;;  %s2105_s1 = sld [smem:[#allocation28_spill]] }
  0x2f   : > { %s425_s15 = scalar_lea.vmem [#allocation5], %s1888_s29  ;;  %s2106_s5 = sld [smem:[#allocation30_spill]] }
  0x30   : > { %s433_s21 = sshll.u32 %s425_s15, 4  ;;  %s422_s24 = scalar_lea.sflag [#allocation6], %s421_s28  ;;  %s434_s21 = int_to_ptr.vmem [resolvable:$true] %s433_s21 }
  0x31   : > { %s1714_s22 = smov [#allocation10]   ;;  %s2107_s9 = sld [smem:[#allocation32_spill]] }
  0x32   : > { %s351_s12 = sshll.u32 %s1714_s22, 4  ;;  %s2109_s16 = smov 64   ;;  %s352_s12 = int_to_ptr.vmem [resolvable:$true] %s351_s12 }
  0x33   : > { %s1715_s28 = smov [#allocation13]   ;;  %s2110_s0 = sld [smem:[#allocation27_spill]] }
  0x34   : > { %s429_s25 = scalar_lea.hbm %s2105_s1, %s1884_s3  ;;  %s406_s13 = scalar_lea.vmem [#allocation2], %s1888_s29 }
  0x35   : > { %s431_s17 = sshll.u32 %s429_s25, 4  ;;  %s349_s11 = sshll.u32 %s2106_s5, 4  ;;  %s432_s17 = int_to_ptr.hbm [resolvable:$true] %s431_s17  ;;  %s350_s11 = int_to_ptr.hbm [resolvable:$true] %s349_s11 }
  0x36   : > { %1306 = dma.hbm_to_vmem [thread:$0]  (!%p1892_p8), %s432_s17, 64, %s434_s21, %s422_s24  }
  0x37   : > { %s383_s15 = sshll.u32 %s2107_s9, 4  ;;  %s2108_s25 = smov 4   ;;  %s384_s15 = int_to_ptr.hbm [resolvable:$true] %s383_s15 }
  0x38   : > { %1293 = dma.hbm_to_vmem [thread:$0]  (!%p1829_p5), %s350_s11, 256, %s352_s12, [#allocation9], %s2109_s16, %s2109_s16, %s2108_s25  }
  0x39   : > { %s385_s17 = sshll.u32 %s1715_s28, 4  ;;  %s410_s22 = scalar_lea.hbm %s2110_s0, %s1884_s3  ;;  %s386_s17 = int_to_ptr.vmem [resolvable:$true] %s385_s17 }
  0x3a   : > { %1299 = dma.hbm_to_vmem [thread:$0]  (!%p1829_p5), %s384_s15, 256, %s386_s17, [#allocation12], %s2109_s16, %s2109_s16, %s2108_s25  }
  0x3b   : > { %s412_s1 = sshll.u32 %s410_s22, 4  ;;  %s414_s5 = sshll.u32 %s406_s13, 4  ;;  %s413_s1 = int_to_ptr.hbm [resolvable:$true] %s412_s1  ;;  %s415_s5 = int_to_ptr.vmem [resolvable:$true] %s414_s5 }
  0x3c   : > { %s2111_s9 = sand.u32 1, %s1696_s19   ;;  %s448_s21 = scalar_lea.hbm %s2058_s2, %s1884_s3 }
  0x3d   : > { %s403_s11 = scalar_lea.sflag [#allocation3], %s2111_s9  ;;  %s450_s26 = sshll.u32 %s448_s21, 4  ;;  %s451_s26 = int_to_ptr.hbm [resolvable:$true] %s450_s26 }
  0x3e   : > { %1303 = dma.hbm_to_vmem [thread:$0]  (!%p1892_p8), %s413_s1, 64, %s415_s5, %s403_s11  }
  0x3f   : > { %s444_s0 = scalar_lea.vmem [#allocation7], %s1888_s29  ;;  %461 = sbr.rel (%p1821_p3) target bundleno = 1003 (0x3eb), region = 64 }
  0x40   : > { %s452_s30 = sshll.u32 %s444_s0, 4  ;;  %s1939_s15 = sand.u32 (!%p1821_p3), 1, %s1692_s18   ;;  %s453_s30 = int_to_ptr.vmem [resolvable:$true] %s452_s30 }
  0x41   : > { %1309 = dma.hbm_to_vmem [thread:$0]  (!%p1892_p8), %s451_s26, 64, %s453_s30, %s422_s24  }
  0x42   : > { %s1942_s5 = sshll.u32 (!%p1821_p3), %s1939_s15, 2  ;;  %s464_s3 = scalar_lea.sflag (!%p1821_p3), [#allocation3], %s1939_s15 }
  0x43   : > { %s467_s9 = scalar_lea.vmem (!%p1821_p3), [#allocation2], %s1942_s5 }
  0x44   : > { %1667 = dma.done.wait (%p1866_p0), %s464_s3, 64  }
  0x45   : > { %1669 = vsyncadd (%p1866_p0), %s464_s3, 4294967232  ;;  %s473_s0 = sand.u32 1, %s1813_s23   ;;  %s477_s27 = scalar_lea.vmem [#allocation5], %s1942_s5 }
  0x46   : > { %s474_s7 = scalar_lea.sflag [#allocation6], %s473_s0 }
  0x47   : > { %1671 = dma.done.wait (%p1866_p0), %s474_s7, 128  }
  0x48   : > { %1673 = vsyncadd (%p1866_p0), %s474_s7, 4294967168  ;;  %s487_s24 = scalar_lea.vmem [#allocation7], %s1942_s5 }
  0x49   : > { %1675 = dma.done.wait (%p65_p1), [#allocation9], 512  }
  0x4a   : > { %1677 = vsyncadd (%p65_p1), [#allocation9], 4294966784 }
  0x4b   : > { %1679 = dma.done.wait (%p65_p1), [#allocation12], 512  }
  0x4c   : > { %1681 = vsyncadd (%p65_p1), [#allocation12], 4294966784  ;;  %v1256_v0 = vld [vmem:[#allocation8 + $0x8] sm:$0xff]  ;;  %v1258_v1 = vld [vmem:[#allocation10 + $0x8] sm:$0xff]  ;;  %vm566_vm0 = vcmask 261120   ;;  %vm699_vm1 = vcmask 64512  }
  0x4d   : > { %v1255_v2 = vld [vmem:[#allocation8] sm:$0xff]  ;;  %627 = vmatpush.bf16.msra.mxu0 %v1256_v0  ;;  %658 = vmatpush.bf16.msra.mxu1 %v1258_v1  ;;  %v1257_v3 = vld [vmem:[#allocation10] sm:$0xff]  ;;  %v599_v4 = vld [vmem:[%s467_s9] sm:$0xf]  ;;  %s1716_s16 = smov 112   ;;  %s1717_s17 = smov 120  }
  0x4e   : > { %v600_v5 = vld [vmem:[%s477_s27] sm:$0xf]  ;;  %v1260_v6 = vld [vmem:[#allocation11 + $0x8] sm:$0xff]  ;;  %v1259_v7 = vld [vmem:[#allocation11] sm:$0xff]  ;;  %s1718_s22 = smov 104   ;;  %vm735_vm2 = vcmask 1043456  }
  0x4f   : > { %689 = vmatpush.bf16.msra.mxu2 %v1260_v6  ;;  %v601_v8 = vld [vmem:[%s487_s24] sm:$0xf]  ;;  %v1384_v9 = vld [vmem:[%s2060_s4] ss:$0 sm:$0xff]  ;;  %s1719_s11 = smov 8   ;;  %s1720_s12 = smov 16  }
  0x50   : > { %v1385_v10 = vld [vmem:[%s2062_s6] ss:$0 sm:$0xff]  ;;  %s1721_s28 = smov 24   ;;  %s1206_s21 = sshll.u32 %s1939_s15, 3  ;;  %vm962_vm3 = vcmask 130048   ;;  %vm965_vm4 = vcmask 195584  }
  0x51   : > { %628 = vmatpush.bf16.msra.mxu0 %v1255_v2  ;;  %659 = vmatpush.bf16.msra.mxu1 %v1257_v3  ;;  %v1386_v26 = vld [vmem:[%s2064_s8] ss:$0 sm:$0xff]  ;;  %s556_s5 = scalar_lea.vmem [#allocation14], %s1206_s21  ;;  %s1252_s9 = sshll.u32 %s1700_s20, 3 }
  0x52   : > { %s2113_s27 = sld [smem:[#allocation33_spill]]  ;;  %s1011_s23 = sshll.u32 %s556_s5, 4  ;;  %s1012_s23 = int_to_ptr.vmem [resolvable:$true] %s1011_s23 }
  0x53   : > { %690 = vmatpush.bf16.msra.mxu2 %v1259_v7  ;;  %s999_s29 = scalar_lea.sflag [#allocation4], %s1939_s15 }
  0x54   : > { %1215 = vmatmul.msk.bf16.vlgmr.msra.gmra.mxu0 %vm566_vm0, %v599_v4  ;;  %1224 = vmatmul.msk.bf16.vlgmr.msra.gmra.mxu1 %vm566_vm0, %v600_v5 }
  0x56   : > { %1233 = vmatmul.msk.bf16.vlgmr.msra.gmra.mxu2 %vm566_vm0, %v601_v8 }
  0x58   : > { %s1009_s24 = scalar_lea.hbm %s2113_s27, %s1252_s9 }
  0x59   : > { %s1013_s14 = sshll.u32 %s1009_s24, 4  ;;  %s1014_s14 = int_to_ptr.hbm [resolvable:$true] %s1013_s14 }
  0x5a   : > { %s1628_s25 = sshra.s32 %s1014_s14, 4  ;;  %s1629_s25 = int_to_ptr.hbm [resolvable:$true] %s1628_s25 }
  0x5b   : > { %p1635_p10 = scmp.lt.s32.totalorder %s1629_s25, %s2113_s27 }
  0xd1   : > { %v630_v11 = vpop.f32.mrf.mxu0  ;;  %v661_v12 = vpop.f32.mrf.mxu1 }
  0xd2   : > { %v631_v13 = vadd.f32 %v1384_v9, %v630_v11  ;;  %v662_v14 = vadd.f32 %v1385_v10, %v661_v12 }
  0xd4   : > { %v696_v15 = vpack.c.bf16 %v631_v13, %v631_v13  ;;  %v697_v16 = vpack.c.bf16 %v662_v14, %v662_v14 }
  0xd6   : > { %v756_v17 = vunpack.c.l.b16 %v696_v15  ;;  %v761_v18 = vunpack.c.l.b16 %v697_v16  ;;  %v704_v19 = vsel %vm699_vm1, %v697_v16, 0 }
  0xd7   : > { %713 = vmatpush.bf16.xpose.msra.mxu3 %v704_v19 }
  0xd8   : > { %v757_v20 = vpack.c.b16 %v756_v17, %v756_v17  ;;  %v762_v21 = vpack.c.b16 %v761_v18, %v761_v18 }
  0xd9   : > { %v632_v22 = vpop.f32.mrf.mxu0  ;;  %v663_v23 = vpop.f32.mrf.mxu1 }
  0xda   : > { %826 = vrot.lane.b32.xlu1 %v762_v21, %s1716_s16  ;;  %763 = vrot.lane.b32.xlu0 %v762_v21, %s1717_s17  ;;  %v692_v29 = vpop.f32.mrf.mxu2 }
  0xdb   : > { %824 = vrot.lane.b32.xlu2 %v757_v20, %s1716_s16  ;;  %v693_v30 = vadd.f32 %v1386_v26, %v692_v29 }
  0xdd   : > { %v698_v31 = vpack.c.bf16 %v693_v30, %v693_v30 }
  0xde   : > { %1234 = vmatmul.msk.bf16.vlgmr.msra.gmra.mxu3 %vm699_vm1, %v696_v15 }
  0xdf   : > { %v798_v35 = vunpack.c.l.b16 %v698_v31  ;;  %v737_v36 = vsel %vm735_vm2, %v698_v31, 0 }
  0xe0   : > { %746 = vmatpush.bf16.msrb.mxu0 %v737_v36 }
  0xe1   : > { %v799_v38 = vpack.c.b16 %v798_v35, %v798_v35 }
  0xe2   : > { %886 = vrot.lane.b32.xlu1 %v762_v21, %s1718_s22  ;;  %758 = vrot.lane.b32.xlu0 %v757_v20, %s1717_s17  ;;  %v694_v39 = vpop.f32.mrf.mxu2 }
  0xe3   : > { %884 = vrot.lane.b32.xlu2 %v757_v20, %s1718_s22 }
  0xeb   : > { %800 = vrot.lane.b32.xlu2 %v799_v38, %s1717_s17 }
 0x135   : > { %v825_v32 = vpop.permute.xlu2 %824 }
 0x13d   : > { %v885_v42 = vpop.permute.xlu2 %884 }
 0x145   : > { %v801_v53 = vpop.permute.xlu2 %800 }
 0x146   : > { %v806_v55 = vsel %vm735_vm2, %v801_v53, 0 }
 0x147   : > { %815 = vmatpush.bf16.msrb.mxu2 %v806_v55 }
 0x14c   : > { %v827_v24 = vpop.permute.xlu1 %826  ;;  %v764_v25 = vpop.permute.xlu0 %763 }
 0x14d   : > { %v769_v27 = vsel %vm699_vm1, %v764_v25, 0  ;;  %v832_v28 = vsel %vm699_vm1, %v827_v24, 0 }
 0x14e   : > { %778 = vmatpush.bf16.xpose.msrb.mxu1 %v769_v27  ;;  %841 = vmatpush.bf16.xpose.msrb.mxu3 %v832_v28 }
 0x154   : > { %v887_v33 = vpop.permute.xlu1 %886  ;;  %v759_v34 = vpop.permute.xlu0 %758 }
 0x155   : > { %v892_v37 = vsel %vm699_vm1, %v887_v33, 0  ;;  %1236 = vmatmul.msk.bf16.vlgmr.msrb.gmra.mxu1 %vm699_vm1, %v759_v34  ;;  %1238 = vmatmul.msk.bf16.vlgmr.msrb.gmra.mxu3 %vm699_vm1, %v825_v32 }
 0x156   : > { %901 = vmatpush.bf16.xpose.msra.mxu1 %v892_v37 }
 0x161   : > { %v715_v40 = vpop.f32.mrf.mxu3 }
 0x162   : > { %v719_v41 = vsel %vm699_vm1, %v715_v40, -inf }
 0x163   : > { %720 = vmax.xlane.f32.xlu1 %v719_v41 }
 0x165   : > { %1240 = vmatmul.msk.bf16.vlgmr.msra.gmra.mxu1 %vm699_vm1, %v885_v42 }
 0x169   : > { %v717_v43 = vpop.f32.mrf.mxu3 }
 0x17c   : > { %920 = vrot.lane.b32.xlu1 %v799_v38, %s1718_s22  ;;  %s1634_s22 = scalar_lea.hbm %s2113_s27, 16 }
 0x1d2   : > { %v780_v44 = vpop.f32.mrf.mxu1 }
 0x1d3   : > { %v784_v45 = vsel %vm699_vm1, %v780_v44, -inf }
 0x1d4   : > { %785 = vmax.xlane.f32.xlu0 %v784_v45 }
 0x1d6   : > { %v721_v46 = vpop.xlane.xlu1 %720 }
 0x1d7   : > { %v722_v47 = vsub.f32 %v715_v40, %v721_v46 }
 0x1d8   : > { %v843_v48 = vpop.f32.mrf.mxu3 }
 0x1d9   : > { %v723_v49 = vpack.c.bf16 %v722_v47, %v722_v47  ;;  %v847_v52 = vsel %vm699_vm1, %v843_v48, -inf }
 0x1da   : > { %v782_v50 = vpop.f32.mrf.mxu1 }
 0x1db   : > { %v724_v51 = vunpack.c.l.bf16 %v723_v49 }
 0x1dc   : > { %848 = vmax.xlane.f32.xlu0 %v847_v52 }
 0x1dd   : > { %v725_v54 = vmul.f32 1.442695, %v724_v51 }
 0x1df   : > { %1388 = vpow2.f32 %v725_v54 }
 0x1e0   : > { %v845_v56 = vpop.f32.mrf.mxu3 }
 0x1e2   : > { %v903_v57 = vpop.f32.mrf.mxu1 }
 0x1e3   : > { %v907_v58 = vsel %vm699_vm1, %v903_v57, -inf }
 0x1e4   : > { %908 = vmax.xlane.f32.xlu2 %v907_v58  ;;  %v1261_v58 = vld [vmem:[#allocation13] sm:$0xff] }
 0x1e5   : > { %v1389_v59 = vpop.eup %1388 }
 0x1e6   : > { %v727_v60 = vpack.c.bf16 %v1389_v59, %v1389_v59  ;;  %v1387_v59 = vld [vmem:[%s2066_s10] ss:$0 sm:$0xff] }
 0x1e7   : > { %567 = vst.msk [vmem:[%s556_s5] sm:$0xff] %vm566_vm0, %v1387_v59 }
 0x1e8   : > { %1235 = vmatmul.msk.bf16.vlgmr.msrb.gmra.mxu0 %vm699_vm1, %v727_v60  ;;  %v728_v61 = vunpack.c.l.bf16 %v727_v60 }
 0x1ea   : > { %v905_v62 = vpop.f32.mrf.mxu1  ;;  %v729_v63 = vsel %vm699_vm1, %v728_v61, 0.0 }
 0x1eb   : > { %730 = vadd.xlane.f32.xlu1 %v729_v63 }
 0x1ee   : > { %v921_v0 = vpop.permute.xlu1 %920 }
 0x1ef   : > { %v926_v1 = vsel %vm735_vm2, %v921_v0, 0 }
 0x1f0   : > { %935 = vmatpush.bf16.msra.mxu2 %v926_v1 }
 0x1fc   : > { %860 = vrot.lane.b32.xlu2 %v799_v38, %s1716_s16  ;;  %s1630_s16 = scalar_lea.hbm %s1629_s25, 8 }
 0x1fd   : > { %p1631_p1 = scmp.ne.s32.totalorder %s1629_s25, %s1630_s16  ;;  %p1636_p11 = scmp.lt.s32.totalorder %s1634_s22, %s1630_s16 }
 0x1ff   : > { %p1632_p3 = pnand %p1631_p1, %p1870_p2  ;;  %p1637_p12 = por %p1636_p11, %p1635_p10 }
 0x201   : > { %p1633_p5 = pneg %p1632_p3 }
 0x203   : > { %p1638_p13 = pnand %p1637_p12, %p1633_p5 }
 0x247   : > { %v786_v2 = vpop.xlane.xlu0 %785 }
 0x248   : > { %v787_v3 = vsub.f32 %v780_v44, %v786_v2 }
 0x24a   : > { %v788_v4 = vpack.c.bf16 %v787_v3, %v787_v3 }
 0x24c   : > { %v789_v5 = vunpack.c.l.bf16 %v788_v4 }
 0x24e   : > { %v790_v6 = vmul.f32 1.442695, %v789_v5 }
 0x24f   : > { %v849_v7 = vpop.xlane.xlu0 %848 }
 0x250   : > { %1390 = vpow2.f32 %v790_v6  ;;  %v850_v8 = vsub.f32 %v843_v48, %v849_v7  ;;  %v995_v6 = vld [vmem:[%s556_s5] sm:$0xff] }
 0x252   : > { %v851_v9 = vpack.c.bf16 %v850_v8, %v850_v8 }
 0x254   : > { %v852_v10 = vunpack.c.l.bf16 %v851_v9 }
 0x256   : > { %v1391_v11 = vpop.eup %1390  ;;  %v853_v12 = vmul.f32 1.442695, %v852_v10 }
 0x257   : > { %v792_v13 = vpack.c.bf16 %v1391_v11, %v1391_v11  ;;  %v909_v14 = vpop.xlane.xlu2 %908 }
 0x258   : > { %1392 = vpow2.f32 %v853_v12  ;;  %v910_v15 = vsub.f32 %v903_v57, %v909_v14  ;;  %v1262_v57 = vld [vmem:[#allocation13 + $0x8] sm:$0xff] }
 0x259   : > { %1237 = vmatmul.msk.bf16.vlgmr.msrb.gmra.mxu2 %vm699_vm1, %v792_v13  ;;  %v793_v16 = vunpack.c.l.bf16 %v792_v13  ;;  %988 = vmatpush.bf16.msra.mxu3 %v1262_v57 }
 0x25a   : > { %v911_v17 = vpack.c.bf16 %v910_v15, %v910_v15 }
 0x25b   : > { %v794_v18 = vsel %vm699_vm1, %v793_v16, 0.0 }
 0x25c   : > { %v912_v19 = vunpack.c.l.bf16 %v911_v17  ;;  %795 = vadd.xlane.f32.xlu0 %v794_v18 }
 0x25d   : > { %989 = vmatpush.bf16.msra.mxu3 %v1261_v58 }
 0x25e   : > { %v1393_v20 = vpop.eup %1392  ;;  %v913_v21 = vmul.f32 1.442695, %v912_v19  ;;  %v731_v60 = vpop.xlane.xlu1 %730 }
 0x25f   : > { %v855_v22 = vpack.c.bf16 %v1393_v20, %v1393_v20  ;;  %v861_v23 = vpop.permute.xlu2 %860 }
 0x260   : > { %1394 = vpow2.f32 %v913_v21  ;;  %v866_v24 = vsel %vm735_vm2, %v861_v23, 0 }
 0x261   : > { %875 = vmatpush.bf16.msra.mxu0 %v866_v24  ;;  %v856_v25 = vunpack.c.l.bf16 %v855_v22 }
 0x263   : > { %v857_v26 = vsel %vm699_vm1, %v856_v25, 0.0 }
 0x264   : > { %1239 = vmatmul.msk.bf16.vlgmr.msra.gmra.mxu0 %vm699_vm1, %v855_v22  ;;  %858 = vadd.xlane.f32.xlu0 %v857_v26 }
 0x265   : > { %v748_v27 = vpop.f32.mrf.mxu0 }
 0x266   : > { %v1395_v28 = vpop.eup %1394 }
 0x267   : > { %v915_v29 = vpack.c.bf16 %v1395_v28, %v1395_v28 }
 0x269   : > { %1241 = vmatmul.msk.bf16.vlgmr.msra.gmra.mxu2 %vm699_vm1, %v915_v29  ;;  %v916_v30 = vunpack.c.l.bf16 %v915_v29 }
 0x26b   : > { %v917_v31 = vsel %vm699_vm1, %v916_v30, 0.0 }
 0x26c   : > { %918 = vadd.xlane.f32.xlu0 %v917_v31 }
 0x26d   : > { %v750_v32 = vpop.f32.mrf.mxu0 }
 0x2cf   : > { %v796_v33 = vpop.xlane.xlu0 %795 }
 0x2d0   : > { %1396 = vrcp.f32 %v796_v33 }
 0x2d6   : > { %v1397_v35 = vpop.eup %1396 }
 0x2d7   : > { %v859_v34 = vpop.xlane.xlu0 %858 }
 0x2d8   : > { %1398 = vrcp.f32 %v859_v34 }
 0x2dc   : > { %v817_v36 = vpop.f32.mrf.mxu2 }
 0x2dd   : > { %v822_v37 = vmul.f32 %v1397_v35, %v817_v36 }
 0x2de   : > { %v1399_v39 = vpop.eup %1398 }
 0x2df   : > { %v823_v38 = vpack.c.bf16 %v822_v37, %v822_v37  ;;  %v919_v44 = vpop.xlane.xlu0 %918 }
 0x2e0   : > { %1400 = vrcp.f32 %v919_v44 }
 0x2e1   : > { %v945_v40 = vunpack.c.l.b16 %v823_v38  ;;  %v877_v41 = vpop.f32.mrf.mxu0  ;;  %1402 = vrcp.f32 %v731_v60 }
 0x2e2   : > { %v882_v42 = vmul.f32 %v1399_v39, %v877_v41 }
 0x2e3   : > { %v946_v43 = vpack.c.b16 %v945_v40, %v945_v40 }
 0x2e4   : > { %v883_v45 = vpack.c.bf16 %v882_v42, %v882_v42  ;;  %v819_v46 = vpop.f32.mrf.mxu2 }
 0x2e5   : > { %947 = vrot.lane.b32.xlu2 %v946_v43, %s1719_s11 }
 0x2e6   : > { %v950_v47 = vunpack.c.l.b16 %v883_v45  ;;  %v1401_v50 = vpop.eup %1400 }
 0x2e7   : > { %v1403_v61 = vpop.eup %1402 }
 0x2e8   : > { %v951_v48 = vpack.c.b16 %v950_v47, %v950_v47  ;;  %v753_v63 = vmul.f32 %v1403_v61, %v748_v27 }
 0x2e9   : > { %v879_v49 = vpop.f32.mrf.mxu0 }
 0x2ea   : > { %952 = vrot.lane.b32.xlu0 %v951_v48, %s1720_s12  ;;  %v754_v0 = vpack.c.bf16 %v753_v63, %v753_v63 }
 0x2ec   : > { %v937_v51 = vpop.f32.mrf.mxu2 }
 0x2ed   : > { %v942_v52 = vmul.f32 %v1401_v50, %v937_v51 }
 0x2ef   : > { %v943_v53 = vpack.c.bf16 %v942_v52, %v942_v52 }
 0x2f1   : > { %v955_v54 = vunpack.c.l.b16 %v943_v53 }
 0x2f3   : > { %v956_v55 = vpack.c.b16 %v955_v54, %v955_v54 }
 0x2f4   : > { %v939_v56 = vpop.f32.mrf.mxu2 }
 0x2f5   : > { %957 = vrot.lane.b32.xlu2 %v956_v55, %s1721_s28 }
 0x33f   : > { %v948_v62 = vpop.permute.xlu2 %947 }
 0x340   : > { %v961_v1 = vsel %vm699_vm1, %v754_v0, %v948_v62 }
 0x34f   : > { %v958_v3 = vpop.permute.xlu2 %957 }
 0x35c   : > { %v953_v2 = vpop.permute.xlu0 %952 }
 0x35d   : > { %v964_v4 = vsel %vm962_vm3, %v961_v1, %v953_v2 }
 0x35e   : > { %v967_v5 = vsel %vm965_vm4, %v964_v4, %v958_v3 }
 0x35f   : > { %1250 = vmatmul.msk.bf16.vlgmr.msra.gmra.mxu3 %vm566_vm0, %v967_v5 }
 0x3e2   : > { %v991_v7 = vpop.f32.mrf.mxu3 }
 0x3e3   : > { %v996_v8 = vadd.f32 %v995_v6, %v991_v7 }
 0x3e5   : > { %997 = vst.msk [vmem:[%s556_s5] sm:$0xff] %vm566_vm0, %v996_v8 }
 0x3e6   : > { %1641 = shalt.err (!%p1638_p13)
}
 0x3e7   : > { %1285 = dma.vmem_to_hbm [thread:$0]  (%p1870_p2), %s1012_s23, 128, %s1014_s14, %s999_s29  }
 0x3ea   : > { %v993_v9 = vpop.f32.mrf.mxu3 }
 0x3eb PF: > { %s2114_s15 = sld [smem:[#allocation20_spill]]  ;;  %p1311_p0 = pnand %p1191_p6, %p1877_p7 }
 0x3ec   : > { %s2116_s12 = sld [smem:[#allocation22_spill]] }
 0x3ed   : > { %p1312_p4 = pneg %p1311_p0 }
 0x3f1   : > { %s1025_s28 = sand.u32 1, %s2114_s15  }
 0x3f2   : > { %s1026_s21 = scalar_lea.sflag [#allocation4], %s1025_s28 }
 0x3f3   : > { %1683 = dma.done.wait (%p1312_p4), %s1026_s21, 128  }
 0x3f4   : > { %1685 = vsyncadd (%p1312_p4), %s1026_s21, 4294967168  ;;  %s32_s22 = sadd.s32 1, %s2116_s12   ;;  %s2117_s26 = sld [smem:[#allocation25_spill]] }
 0x3f5   : > { %p29_p9 = scmp.ge.s32.totalorder %s32_s22, 4   ;;  %s2118_s20 = sld [smem:[#allocation21_spill]] }
 0x3f6   : > { %s2119_s21 = sld [smem:[#allocation23_spill]]  ;;  %s2120_s17 = smov %s1692_s18 }
 0x3f7   : > { %s2121_s18 = smov %s1696_s19  ;;  %31 = sbr.rel (!%p29_p9) target bundleno = 18 (0x12), region = 160 }
 0x3fa   : > { %s2122_s19 = smov %s2117_s26 }
 0x3fc   :  { %1032 = vsyncpa [#allocation3], 1 }
 0x3fd   :  { %1034 = vsyncpa [#allocation3 + $0x1], 1 }
 0x3fe   :  { %1035 = vsyncpa [#allocation6], 1 }
 0x3ff   :  { %1037 = vsyncpa [#allocation6 + $0x1], 1 }
 0x400   :  { %1038 = vsyncpa [#allocation9], 1 }
 0x401   :  { %1039 = vsyncpa [#allocation12], 1 }
 0x402   :  { %1040 = vsyncpa [#allocation4], 1 }
 0x403   :  { %1042 = vsyncpa [#allocation4 + $0x1], 1 }

</bundles_post_ra>
